<compile_context>
chip_gen: v6e
topology: v6e:2x2x1
jax: 0.10.0
libtpu: 0.0.40
codegen_flags: <defaults>
</compile_context>

<pallas_src>
import functools

import jax
import jax.numpy as jnp
import numpy as np
from jax.experimental import pallas as pl
from jax.experimental.pallas import tpu as pltpu


def _round_up(a, m):
    return (a + m - 1) // m * m


def _se_gate(pooled_col, w1t, w2):
    """Per-channel SE gate for one image.

    pooled_col: (C, 1) f32   mean_{HW} x[c]
    w1t:        (C, R) f32   fc1.weight.T
    w2:         (C, R) f32   fc2.weight
    returns     (C, 1) f32   sigmoid(relu(pooled @ W1.T) @ W2.T)

    Fully vectorized: one (C, R) broadcast multiply + sublane reduce for fc1,
    one (C, R) broadcast multiply + lane reduce for fc2, then EUP sigmoid.
    """
    y1 = jnp.maximum(jnp.sum(pooled_col * w1t, axis=0, keepdims=True), 0.0)  # (1, R)
    pre = jnp.sum(y1 * w2, axis=-1, keepdims=True)                           # (C, 1)
    return jax.nn.sigmoid(pre)


def _se_fused_kernel(x_ref, w1t_ref, w2_ref, o_ref, *, inv_hw):
    # One grid step per batch image: pool + excitation + scale on (C, HW).
    x_nat = x_ref[0]                                              # (C, HW) native dtype
    pooled = jnp.sum(x_nat.astype(jnp.float32), axis=-1, keepdims=True) * inv_hw
    gate = _se_gate(pooled, w1t_ref[...], w2_ref[...])            # (C, 1) f32
    # Multiply / store in the input dtype (halves store-side traffic for bf16).
    o_ref[0] = x_nat * gate.astype(o_ref.dtype)


def _se_pool_gate_kernel(x_ref, w1t_ref, w2_ref, gate_ref, acc_ref, *, hw,
                         hw_tile, inv_hw):
    # Tiled pass 1: accumulate per-channel spatial sums over HW tiles of one
    # image; compute the gate on the last tile.
    k = pl.program_id(1)

    @pl.when(k == 0)
    def _init():
        acc_ref[...] = jnp.zeros_like(acc_ref)

    xt = x_ref[0].astype(jnp.float32)                             # (C, hw_tile)
    if hw % hw_tile:
        # Tail block reads undefined lanes past the array edge -> mask them.
        lane = jax.lax.broadcasted_iota(jnp.int32, xt.shape, 1)
        xt = jnp.where(k * hw_tile + lane < hw, xt, 0.0)

    # Lane-dense accumulation on the VPU (hw_tile is a multiple of 128);
    # the single cross-lane reduce happens once per image in the finalize.
    folded = xt[:, 0:128]
    for j in range(1, hw_tile // 128):
        folded = folded + xt[:, j * 128:(j + 1) * 128]
    acc_ref[...] += folded

    @pl.when(k == pl.num_programs(1) - 1)
    def _finalize():
        pooled = jnp.sum(acc_ref[...], axis=-1, keepdims=True) * inv_hw  # (C, 1)
        gate_ref[0] = _se_gate(pooled, w1t_ref[...], w2_ref[...])


def _se_scale_kernel(x_ref, gate_ref, o_ref):
    # Tiled pass 2: lane-dense, channel-broadcast scale in the input dtype.
    # Boundary (tail) writes are masked by Pallas, so no masking needed here.
    o_ref[0] = x_ref[0] * gate_ref[0].astype(o_ref.dtype)


def _default_vmem_limit_bytes():
    """Generation-aware scoped-VMEM limit (v5e/v6e ~89 MiB, v7x ~45 MiB)."""
    try:
        cap = getattr(pltpu.get_tpu_info(), "vmem_capacity_bytes", None)
    except Exception:
        cap = None
    if cap:
        return min(int(cap * 0.7), 112 * 1024 * 1024)
    return 32 * 1024 * 1024


def sparse_se_block(x, w1, w2, *, hw_tile=None, force_tiled=False,
                    vmem_limit_bytes=None):
    """SE forward. x: (B, C, H, W); w1 = fc1.weight (R, C); w2 = fc2.weight (C, R)."""
    b, c, h, w = x.shape
    r = w1.shape[0]
    assert w1.shape == (r, c) and w2.shape == (c, r)
    hw = h * w
    itemsize = np.dtype(x.dtype).itemsize

    if vmem_limit_bytes is None:
        vmem_limit_bytes = _default_vmem_limit_bytes()
    budget = int(vmem_limit_bytes * 0.85)      # live-buffer budget inside the limit

    # Free reshape (trailing dims merge, no HBM copy): lane-dense (B, C, H*W).
    x3 = x.reshape(b, c, hw)
    w1t = jnp.asarray(w1, jnp.float32).T       # (C, R)
    w2f = jnp.asarray(w2, jnp.float32)         # (C, R)
    inv_hw = 1.0 / hw

    def cparams(sem):
        return pltpu.CompilerParams(dimension_semantics=sem,
                                    vmem_limit_bytes=vmem_limit_bytes)

    # Fused path per-block VMEM: 2 in + 2 out buffers (double-buffered, native
    # dtype) + one f32 temp for the pooling cast + resident weights (dtype-aware).
    fused_bytes = (4 * itemsize + 4) * c * hw + 4 * (c * r * 4)
    use_fused = (not force_tiled) and fused_bytes <= budget

    if use_fused:
        out3 = pl.pallas_call(
            functools.partial(_se_fused_kernel, inv_hw=inv_hw),
            out_shape=jax.ShapeDtypeStruct((b, c, hw), x.dtype),
            grid_spec=pltpu.PrefetchScalarGridSpec(
                num_scalar_prefetch=0,
                grid=(b,),
                in_specs=[
                    pl.BlockSpec((1, c, hw), lambda i: (i, 0, 0)),
                    pl.BlockSpec((c, r), lambda i: (0, 0)),
                    pl.BlockSpec((c, r), lambda i: (0, 0)),
                ],
                out_specs=pl.BlockSpec((1, c, hw), lambda i: (i, 0, 0)),
            ),
            compiler_params=cparams(("parallel",)),
        )(x3, w1t, w2f)
        return out3.reshape(b, c, h, w)

    # ---- Tiled fallback: one image's (C, HW) slab does not fit VMEM. ----
    if hw_tile is None:
        per_lane = c * (4 * itemsize + 4)
        hw_tile = min((2 * 1024 * 1024) // max(c * itemsize, 1),  # ~2 MiB x blocks
                      max(budget // per_lane, 128),
                      8192)                                       # bound lane-fold unroll
    hw_tile = max(128, (hw_tile // 128) * 128)      # multiple of 128 lanes
    hw_tile = min(hw_tile, _round_up(hw, 128))
    n_hw = pl.cdiv(hw, hw_tile)
    # TODO(synk): for channel counts so large that even a (C, 128) block exceeds
    # the VMEM budget, an additional channel-tiling grid axis would be needed.

    # Pass 1: pool + gate.  Batch axis "parallel" (megacore sharding on v7x),
    # HW axis is the reduction -> "arbitrary"; gate block stays resident.
    gate = pl.pallas_call(
        functools.partial(_se_pool_gate_kernel, hw=hw, hw_tile=hw_tile,
                          inv_hw=inv_hw),
        out_shape=jax.ShapeDtypeStruct((b, c, 1), jnp.float32),
        grid_spec=pltpu.PrefetchScalarGridSpec(
            num_scalar_prefetch=0,
            grid=(b, n_hw),
            in_specs=[
                pl.BlockSpec((1, c, hw_tile), lambda i, k: (i, 0, k)),
                pl.BlockSpec((c, r), lambda i, k: (0, 0)),
                pl.BlockSpec((c, r), lambda i, k: (0, 0)),
            ],
            out_specs=pl.BlockSpec((1, c, 1), lambda i, k: (i, 0, 0)),
            scratch_shapes=[pltpu.VMEM((c, 128), jnp.float32)],
        ),
        compiler_params=cparams(("parallel", "arbitrary")),
    )(x3, w1t, w2f)

    # Pass 2: re-stream x and apply the gate.  Fully independent tiles ->
    # both axes "parallel"; lane-dense blocks; tail writes masked by Pallas.
    out3 = pl.pallas_call(
        _se_scale_kernel,
        out_shape=jax.ShapeDtypeStruct((b, c, hw), x.dtype),
        grid_spec=pltpu.PrefetchScalarGridSpec(
            num_scalar_prefetch=0,
            grid=(b, n_hw),
            in_specs=[
                pl.BlockSpec((1, c, hw_tile), lambda i, k: (i, 0, k)),
                pl.BlockSpec((1, c, 1), lambda i, k: (i, 0, 0)),
            ],
            out_specs=pl.BlockSpec((1, c, hw_tile), lambda i, k: (i, 0, k)),
        ),
        compiler_params=cparams(("parallel", "parallel")),
    )(x3, gate)
    return out3.reshape(b, c, h, w)


if __name__ == "__main__":
    key = jax.random.PRNGKey(0)

    # Small shapes consistent with the module: channel=4, reduction=16 -> R=1
    B, C, H, W = 2, 4, 16, 16
    reduction = 16
    R = max(C // reduction, 1)

    x = jax.random.normal(key, (B, C, H, W), dtype=jnp.float32)

    # Deterministic init exactly as in __init__: nn.init.constant_(w, 1/in_features)
    w1 = jnp.full((R, C), 1.0 / C, dtype=jnp.float32)   # fc1: Linear(C -> R, bias=False)
    w2 = jnp.full((C, R), 1.0 / R, dtype=jnp.float32)   # fc2: Linear(R -> C, bias=False)

    # Pure-JAX reference of the SE forward pass.
    pooled = x.mean(axis=(2, 3))                                    # (B, C)
    gate = jax.nn.sigmoid(jnp.maximum(pooled @ w1.T, 0.0) @ w2.T)   # (B, C)
    ref = x * gate[:, :, None, None]

    # Fused single-pass per-batch path (default for shapes that fit VMEM).
    out_fused = jax.block_until_ready(sparse_se_block(x, w1, w2))
    np.testing.assert_allclose(np.asarray(out_fused), np.asarray(ref),
                               rtol=1e-5, atol=1e-5)

    # Tiled two-pass path (VMEM-bounded fallback for huge C*H*W), forced here
    # with 128-lane spatial tiles so the accumulate/finalize logic executes.
    out_tiled = jax.block_until_ready(
        sparse_se_block(x, w1, w2, force_tiled=True, hw_tile=128))
    np.testing.assert_allclose(np.asarray(out_tiled), np.asarray(ref),
                               rtol=1e-5, atol=1e-5)

    print("KERNEL_OK")
</pallas_src>

<mosaic_0001>
module attributes {stable_mosaic.version = 11 : i64} {
  func.func @_se_fused_kernel(%arg0: i32, %arg1: memref<1x4x256xf32, #tpu.memory_space<vmem>>, %arg2: memref<4x1xf32, #tpu.memory_space<vmem>>, %arg3: memref<4x1xf32, #tpu.memory_space<vmem>>, %arg4: memref<1x4x256xf32, #tpu.memory_space<vmem>>) attributes {dimension_semantics = [#tpu.dimension_semantics<parallel>], iteration_bounds = array<i64: 2>, scalar_prefetch = 0 : i64, scratch_operands = 0 : i64, tpu.core_type = #tpu.core_type<tc>, window_params = [{transform_indices = @transform_0, window_bounds = array<i64: 1, 4, 256>}, {pipeline_mode = #tpu.pipeline_mode<synchronous>, transform_indices = @transform_1, window_bounds = array<i64: 4, 1>}, {pipeline_mode = #tpu.pipeline_mode<synchronous>, transform_indices = @transform_2, window_bounds = array<i64: 4, 1>}, {transform_indices = @transform_3, window_bounds = array<i64: 1, 4, 256>}]} {
    %c0 = arith.constant 0 : index
    %c0_0 = arith.constant 0 : index
    %c0_1 = arith.constant 0 : index
    %0 = vector.load %arg1[%c0, %c0_0, %c0_1] : memref<1x4x256xf32, #tpu.memory_space<vmem>>, vector<1x4x256xf32>
    %1 = vector.shape_cast %0 : vector<1x4x256xf32> to vector<4x256xf32>
    %cst = arith.constant dense<0.000000e+00> : vector<4xf32>
    %2 = vector.multi_reduction <add>, %1, %cst [1] : vector<4x256xf32> to vector<4xf32>
    %3 = vector.shape_cast %2 : vector<4xf32> to vector<4x1xf32>
    %cst_2 = arith.constant 3.906250e-03 : f32
    %4 = vector.broadcast %cst_2 : f32 to vector<4x1xf32>
    %5 = arith.mulf %3, %4 : vector<4x1xf32>
    %c0_3 = arith.constant 0 : index
    %c0_4 = arith.constant 0 : index
    %6 = vector.load %arg2[%c0_3, %c0_4] : memref<4x1xf32, #tpu.memory_space<vmem>>, vector<4x1xf32>
    %c0_5 = arith.constant 0 : index
    %c0_6 = arith.constant 0 : index
    %7 = vector.load %arg3[%c0_5, %c0_6] : memref<4x1xf32, #tpu.memory_space<vmem>>, vector<4x1xf32>
    %8 = arith.mulf %5, %6 : vector<4x1xf32>
    %cst_7 = arith.constant dense<0.000000e+00> : vector<1xf32>
    %9 = vector.multi_reduction <add>, %8, %cst_7 [0] : vector<4x1xf32> to vector<1xf32>
    %10 = vector.shape_cast %9 : vector<1xf32> to vector<1x1xf32>
    %cst_8 = arith.constant 0.000000e+00 : f32
    %11 = vector.broadcast %cst_8 : f32 to vector<1x1xf32>
    %12 = arith.maximumf %10, %11 : vector<1x1xf32>
    %13 = vector.broadcast %12 : vector<1x1xf32> to vector<4x1xf32>
    %14 = arith.mulf %13, %7 : vector<4x1xf32>
    %cst_9 = arith.constant dense<0.000000e+00> : vector<4xf32>
    %15 = vector.multi_reduction <add>, %14, %cst_9 [1] : vector<4x1xf32> to vector<4xf32>
    %16 = vector.shape_cast %15 : vector<4xf32> to vector<4x1xf32>
    %17 = arith.negf %16 : vector<4x1xf32>
    %18 = math.exp %17 : vector<4x1xf32>
    %cst_10 = arith.constant 1.000000e+00 : f32
    %19 = vector.broadcast %cst_10 : f32 to vector<4x1xf32>
    %20 = arith.addf %19, %18 : vector<4x1xf32>
    %21 = arith.divf %19, %20 : vector<4x1xf32>
    %22 = vector.broadcast %21 : vector<4x1xf32> to vector<4x256xf32>
    %23 = arith.mulf %1, %22 : vector<4x256xf32>
    %c0_11 = arith.constant 0 : index
    %c0_12 = arith.constant 0 : index
    %c0_13 = arith.constant 0 : index
    %24 = vector.load %arg4[%c0_11, %c0_12, %c0_13] : memref<1x4x256xf32, #tpu.memory_space<vmem>>, vector<1x4x256xf32>
    %25 = vector.shape_cast %24 : vector<1x4x256xf32> to vector<4x256xf32>
    %26 = vector.shape_cast %23 : vector<4x256xf32> to vector<1x4x256xf32>
    tpu.vector_store %arg4[%c0_11, %c0_12, %c0_13], %26 {strides = array<i32>} : memref<1x4x256xf32, #tpu.memory_space<vmem>>, vector<1x4x256xf32>,
    return
  }
  func.func @transform_0(%arg0: i32) -> (i32, i32, i32) {
    %c0_i32 = arith.constant 0 : i32
    %c0_i32_0 = arith.constant 0 : i32
    %c0_i32_1 = arith.constant 0 : i32
    return %arg0, %c0_i32, %c0_i32_0 : i32, i32, i32
  }
  func.func @transform_1(%arg0: i32) -> (i32, i32) {
    %c0_i32 = arith.constant 0 : i32
    %c0_i32_0 = arith.constant 0 : i32
    %c0_i32_1 = arith.constant 0 : i32
    return %c0_i32, %c0_i32_0 : i32, i32
  }
  func.func @transform_2(%arg0: i32) -> (i32, i32) {
    %c0_i32 = arith.constant 0 : i32
    %c0_i32_0 = arith.constant 0 : i32
    %c0_i32_1 = arith.constant 0 : i32
    return %c0_i32, %c0_i32_0 : i32, i32
  }
  func.func @transform_3(%arg0: i32) -> (i32, i32, i32) {
    %c0_i32 = arith.constant 0 : i32
    %c0_i32_0 = arith.constant 0 : i32
    %c0_i32_1 = arith.constant 0 : i32
    return %arg0, %c0_i32, %c0_i32_0 : i32, i32, i32
  }
}

</mosaic_0001>

<bundles_post_ra>
// kernel: tpu_custom_call.1
= control target key start
LH: loop header
LB: loop body
LE: loop exit
PB: predicated region body
PF: predicated region fallthrough
CT: control target
= control target key end

     0   :  { %8 = vsyncpa [#allocation3], 0  ;;  %s657_s0 = inlined_call_operand.hbm [shape: f32[2,4,256], index: 0, kind: input, shape index: {}]   ;;  %s658_s1 = inlined_call_operand.vmem [shape: f32[4,1], index: 1, kind: input, shape index: {}]   ;;  %s659_s2 = inlined_call_operand.vmem [shape: f32[4,1], index: 2, kind: input, shape index: {}]   ;;  %s660_s3 = inlined_call_operand.hbm [shape: f32[2,4,256], index: 3, kind: output, shape index: {}]  }
   0x1   :  { %10 = vsyncpa [#allocation3 + $0x1], 0 }
   0x2   :  { %11 = vsyncpa [#allocation4], 0 }
   0x3   :  { %13 = vsyncpa [#allocation4 + $0x1], 0  ;;  %s506_s12 = smov 0   ;;  %s508_s13 = smov 0  }
   0x4   :  { %s510_s14 = smov 0   ;;  %s512_s15 = smov 0  }
   0x5 LB: > { %s527_s16 = sadd.s32 4294967295, %s480_s15   ;;  %s317_s17 = sadd.s32 4294967294, %s480_s15   ;;  %s480_s15 = sphi %s512_s15, %s677_s15   ;;  %s476_s14 = sphi %s510_s14, %s676_s14   ;;  %s472_s13 = sphi %s508_s13, %s675_s13   ;;  %s468_s12 = sphi %s506_s12, %s674_s12  }
   0x6   : > { %s531_s18 = sadd.s32 1, %s480_s15   ;;  %s26_s19 = sadd.s32 1, %s476_s14 }
   0x7   : > { %s23_s20 = ssub.s32 %s480_s15, %s531_s18  ;;  %p33_p0 = scmp.ne.s32.totalorder %s476_s14, %s472_s13 }
   0x8   : > { %p24_p1 = scmp.eq.s32.totalorder %s23_s20, 0  ;;  %p34_p2 = scmp.eq.s32.totalorder %s480_s15, 0 }
   0x9   : > { %p39_p3 = scmp.ne.s32.totalorder %s472_s13, %s468_s12  ;;  %p40_p4 = scmp.eq.s32.totalorder %s527_s16, 0 }
   0xa   : > { %s543_s21 = scalar_select %p24_p1, %s476_s14, %s26_s19  }
   0xb   : > { %p545_p5 = por %p34_p2, %p33_p0  ;;  %p549_p6 = por %p40_p4, %p39_p3 }
   0xc   : > { %p105_p7 = scmp.eq.s32.totalorder %s527_s16, 1  ;;  %p111_p8 = scmp.eq.s32.totalorder %s317_s17, 1 }
   0xd   : > { %s664_s23 = scalar_select %p549_p6, 1, 0 }
   0xe   : > { %p346_p10 = scmp.lt.s32.totalorder %s480_s15, 2  ;;  %p556_p11 = por %p105_p7, %p33_p0 }
   0xf   : > { %p560_p12 = por %p111_p8, %p39_p3  ;;  %s137_s26 = sand.u32 1, %s476_s14  }
  0x10   : > { %s665_s24 = scalar_select %p556_p11, 1, 0 }
  0x11   : > { %s666_s25 = scalar_select %p560_p12, 1, 0 }
  0x12   : > { %s332_s27 = sshll.u32 %s480_s15, 7  ;;  %s320_s28 = sshll.u32 %s137_s26, 3 }
  0x13   : > { %s569_s4 = scalar_lea.hbm %s657_s0, %s332_s27  ;;  %s141_s5 = scalar_lea.vmem [#allocation2], %s320_s28 }
  0x14   : > { %s149_s6 = sshll.u32 %s141_s5, 4  ;;  %p573_p13 = pnand %p346_p10, %p545_p5  ;;  %s577_s6 = int_to_ptr.vmem [resolvable:$true] %s149_s6 }
  0x15   : > { %s138_s8 = scalar_lea.sflag [#allocation3], %s137_s26  ;;  %s388_s9 = scalar_lea.hbm %s569_s4, 128 }
  0x16   : > { %p389_p2 = scmp.ne.s32.totalorder %s569_s4, %s388_s9  ;;  %p390_p3 = pneg %p573_p13 }
  0x17   : > { %s393_s17 = scalar_lea.hbm %s657_s0, 256  ;;  %p394_p5 = scmp.lt.s32.totalorder %s569_s4, %s657_s0 }
  0x18   : > { %p391_p4 = pnand %p390_p3, %p389_p2  ;;  %p395_p8 = scmp.lt.s32.totalorder %s393_s17, %s388_s9 }
  0x1a   : > { %p392_p7 = pneg %p391_p4  ;;  %p396_p10 = por %p395_p8, %p394_p5 }
  0x1c   : > { %p397_p9 = pnand %p396_p10, %p392_p7 }
  0x1e   : > { %400 = shalt.err (!%p397_p9)
}
  0x1f   : > { %s401_s22 = scalar_lea.vmem %s577_s6, 128  ;;  %s482_s26 = smov [#allocation2]  }
  0x20   : > { %p402_p0 = scmp.ne.s32.totalorder %s577_s6, %s401_s22  ;;  %s406_s27 = sshll.u32 %s482_s26, 4  ;;  %s407_s27 = int_to_ptr.vmem [resolvable:$false] %s406_s27 }
  0x21   : > { %s408_s28 = scalar_lea.vmem %s407_s27, 256  ;;  %p409_p4 = scmp.lt.s32.totalorder %s577_s6, %s407_s27 }
  0x22   : > { %p404_p1 = pnand %p402_p0, %p390_p3  ;;  %p410_p12 = scmp.lt.s32.totalorder %s408_s28, %s401_s22 }
  0x24   : > { %p405_p2 = pneg %p404_p1  ;;  %p411_p11 = por %p410_p12, %p409_p4 }
  0x26   : > { %p412_p6 = pnand %p411_p11, %p405_p2 }
  0x28   : > { %415 = shalt.err (!%p412_p6)
}
  0x29   : > { %341 = dma.hbm_to_vmem [thread:$0]  (!%p573_p13), %s569_s4, 128, %s577_s6, %s138_s8  }
  0x2a   : > { %p668_p9 = scmp.lt.s32.totalorder %s480_s15, 3  ;;  %p669_p7 = scmp.ge.s32.totalorder %s480_s15, 1 }
  0x2c   : > { %p155_p0 = pnand %p669_p7, %p668_p9 }
  0x2d   : > { %s604_s29 = sand.u32 (!%p155_p0), 1, %s472_s13   ;;  %p670_p6 = scmp.ne.s32.totalorder (!%p155_p0), %s664_s23, 0 }
  0x2e   : > { %158 = sbr.rel (%p155_p0) target bundleno = 390 (0x186), region = 32  ;;  %s324_s30 = sshll.u32 (!%p155_p0), %s604_s29, 3 }
  0x2f   : > { %s161_s5 = scalar_lea.sflag (!%p155_p0), [#allocation3], %s604_s29  ;;  %s164_s7 = scalar_lea.vmem (!%p155_p0), [#allocation2], %s324_s30 }
  0x33   : > { %459 = dma.done.wait (%p670_p6), %s161_s5, 128  }
  0x34   : > { %461 = vsyncadd (%p670_p6), %s161_s5, 4294967168  ;;  %vm191_vm0 = vcmask 1043456   ;;  %v187_v0 = vld [vmem:[%s164_s7] sm:$0xff]  ;;  %v483_v5 = vmov 0   ;;  %vm201_vm1 = vcmask 3072   ;;  %v225_v26 = vlaneseq  ;;  %s333_s9 = sshll.u32 %s527_s16, 7 }
  0x35   : > { %v189_v1 = vcombine.high %v187_v0, %v187_v0  ;;  %v192_v2 = vsel %vm191_vm0, %v187_v0, 0.0  ;;  %382 = vset.pattern.permute.xlu0 %v483_v5  ;;  %v198_v6 = vld [vmem:[%s658_s1] sm:$0xf]  ;;  %v484_v24 = vmov 839922192   ;;  %s186_s10 = scalar_lea.vmem [#allocation5], %s324_s30  ;;  %s245_s20 = scalar_lea.hbm %s660_s3, %s333_s9 }
  0x36   : > { %v199_v17 = vld [vmem:[%s659_s2] sm:$0xf]  ;;  %v223_v25 = vunpack.c.l.s4 %v484_v24  ;;  %v226_v28 = vshrl.u32 %v225_v26, 7  ;;  %s247_s11 = sshll.u32 %s186_s10, 4  ;;  %s233_s22 = scalar_lea.sflag [#allocation4], %s604_s29  ;;  %s248_s11 = int_to_ptr.vmem [resolvable:$true] %s247_s11 }
  0x37   : > { %v193_v3 = vsel %vm191_vm0, %v189_v1, 0.0  ;;  %s416_s26 = scalar_lea.vmem %s248_s11, 128  ;;  %p671_p12 = scmp.ne.s32.totalorder %s665_s24, 0 }
  0x38   : > { %v194_v4 = vadd.f32 %v193_v3, %v192_v2  ;;  %v224_v27 = vunpack.c.0.s8 %v223_v25  ;;  %p417_p11 = scmp.ne.s32.totalorder %s248_s11, %s416_s26  ;;  %s485_s27 = smov [#allocation5]  }
  0x39   : > { %s420_s28 = sshll.u32 %s485_s27, 4  ;;  %s421_s28 = int_to_ptr.vmem [resolvable:$false] %s420_s28 }
  0x3a   : > { %195 = vadd.xlane.f32.xlu0 %v194_v4  ;;  %v227_v29 = vsub.s32 %v224_v27, %v226_v28  ;;  %p418_p13 = pnand %p417_p11, %p671_p12  ;;  %s422_s16 = scalar_lea.vmem %s421_s28, 256 }
  0x3b   : > { %p423_p3 = scmp.lt.s32.totalorder %s248_s11, %s421_s28  ;;  %p424_p5 = scmp.lt.s32.totalorder %s422_s16, %s416_s26 }
  0x3c   : > { %p419_p1 = pneg %p418_p13 }
  0x3d   : > { %p425_p8 = por %p424_p5, %p423_p3 }
  0x3f   : > { %p426_p10 = pnand %p425_p8, %p419_p1 }
  0xc3   : > { %v196_v7 = vpop.xlane.xlu0 %195 }
  0xc4   : > { %v197_v8 = vmul.f32 0.00390625, %v196_v7 }
  0xc6   : > { %v200_v9 = vmul.f32 %v198_v6, %v197_v8 }
  0xc8   : > { %v202_v10 = vsel %vm201_vm1, %v200_v9, 0.0 }
  0xc9   : > { %v203_v11 = vrot.slane %v202_v10, 4 }
  0xcb   : > { %v204_v12 = vadd.f32 %v203_v11, %v202_v10 }
  0xcd   : > { %v205_v13 = vrot.slane %v204_v12, 2 }
  0xcf   : > { %v206_v14 = vadd.f32 %v205_v13, %v204_v12 }
  0xd1   : > { %v207_v15 = vrot.slane %v206_v14, 1 }
  0xd3   : > { %v208_v16 = vadd.f32 %v207_v15, %v206_v14 }
  0xd5   : > { %v209_v18 = vmax.f32 %v208_v16, 0.0 }
  0xd7   : > { %v210_v19 = vmul.f32 %v209_v18, %v199_v17 }
  0xd9   : > { %v326_v20 = vmul.f32 -1.442695, %v210_v19 }
  0xdb   : > { %384 = vpow2.f32 %v326_v20 }
  0xe8   : > { %v385_v21 = vpop.eup %384 }
  0xe9   : > { %v215_v22 = vadd.f32 1.0, %v385_v21 }
  0xeb   : > { %386 = vrcp.f32 %v215_v22 }
  0xf8   : > { %v387_v23 = vpop.eup %386 }
  0xf9   : > { %220 = vperm.xlu0 %382, %v387_v23  }
 0x174   : > { %v221_v30 = vpop.permute.xlu0 %220 }
 0x175   : > { %v228_v31 = vrot.slane %v221_v30, %v227_v29 }
 0x177   : > { %v230_v32 = vmul.f32 %v228_v31, %v187_v0 }
 0x179   : > { %231 = vst [vmem:[%s186_s10] sm:$0xff] %v230_v32 }
 0x17a   : > { %429 = shalt.err (!%p426_p10)
}
 0x17b   : > { %s430_s30 = scalar_lea.hbm %s245_s20, 128  ;;  %s434_s7 = scalar_lea.hbm %s660_s3, 256 }
 0x17c   : > { %p431_p2 = scmp.ne.s32.totalorder %s245_s20, %s430_s30  ;;  %p435_p7 = scmp.lt.s32.totalorder %s245_s20, %s660_s3 }
 0x17d   : > { %p436_p0 = scmp.lt.s32.totalorder %s434_s7, %s430_s30 }
 0x17e   : > { %p432_p4 = pnand %p431_p2, %p671_p12 }
 0x17f   : > { %p437_p6 = por %p436_p0, %p435_p7 }
 0x180   : > { %p433_p9 = pneg %p432_p4 }
 0x182   : > { %p438_p11 = pnand %p437_p6, %p433_p9 }
 0x184   : > { %441 = shalt.err (!%p438_p11)
}
 0x185   : > { %336 = dma.vmem_to_hbm [thread:$0]  (%p671_p12), %s248_s11, 128, %s245_s20, %s233_s22  }
 0x186 PF: > { %s259_s23 = sand.u32 1, %s468_s12   ;;  %p672_p13 = scmp.ne.s32.totalorder %s666_s25, 0 }
 0x187   : > { %p673_p1 = scmp.ge.s32.totalorder %s480_s15, 2  ;;  %s260_s8 = scalar_lea.sflag [#allocation4], %s259_s23 }
 0x189   : > { %p343_p3 = pnand %p673_p1, %p672_p13 }
 0x18b   : > { %p344_p5 = pneg %p343_p3 }
 0x18d   : > { %463 = dma.done.wait (%p344_p5), %s260_s8, 128  }
 0x18e   : > { %465 = vsyncadd (%p344_p5), %s260_s8, 4294967168  ;;  %p16_p8 = scmp.ge.s32.totalorder %s531_s18, 4   ;;  %s674_s12 = smov %s472_s13 }
 0x18f   : > { %s675_s13 = smov %s476_s14  ;;  %s676_s14 = smov %s543_s21 }
 0x190   : > { %s677_s15 = smov %s531_s18  ;;  %18 = sbr.rel (!%p16_p8) target bundleno = 5 (0x5), region = 77 }
 0x195   :  { %265 = vsyncpa [#allocation3], 1 }
 0x196   :  { %267 = vsyncpa [#allocation3 + $0x1], 1 }
 0x197   :  { %268 = vsyncpa [#allocation4], 1 }
 0x198   :  { %270 = vsyncpa [#allocation4 + $0x1], 1 }

</bundles_post_ra>
